<compile_context>
chip_gen: v7x
topology: tpu7x:2x2x1
jax: 0.10.0
libtpu: 0.0.40
codegen_flags: <defaults>
</compile_context>

<pallas_src>
import jax
import jax.numpy as jnp
from jax.experimental import pallas as pl
from jax.experimental.pallas import tpu as pltpu


# Double-buffered live-byte budget per grid step (input 3-ch block + 3 output
# blocks, x2 for double buffering). 24 MiB is safe on every generation,
# including v7x's 64 MiB physical / 32 MiB scoped VMEM.
_VMEM_BUDGET_BYTES = 24 << 20
_VMEM_LIMIT_BYTES = 32 << 20


def _split_kernel(x_ref, s0_ref, s1_ref, s2_ref):
    # x_ref block: (Bt, 3, S, 128) or (Bt, 3, HW); each split block has the
    # same shape with channel extent 1. Writes come straight from static
    # channel slices of the input ref (no full-tile temporary).
    if len(x_ref.shape) == 4:
        s0_ref[...] = x_ref[:, 0:1, :, :]
        s1_ref[...] = x_ref[:, 1:2, :, :]
        s2_ref[...] = x_ref[:, 2:3, :, :]
    else:
        s0_ref[...] = x_ref[:, 0:1, :]
        s1_ref[...] = x_ref[:, 1:2, :]
        s2_ref[...] = x_ref[:, 2:3, :]


def _max_rows(itemsize):
    # Per grid step, live bytes ~= 2 (double-buffer) * (3-ch input + 3 outputs)
    # * rows * 128 lanes * itemsize.
    per_row = 2 * 6 * 128 * itemsize
    return max(8, _VMEM_BUDGET_BYTES // per_row)  # f32 -> 4096 rows (~12.6 MB/step moved)


def _pick_tiles(B, R, itemsize):
    """Pick (batch_tile, row_tile) for the (B, 3, R, 128) layout."""
    cap = _max_rows(itemsize)

    # Row tile: biggest multiple of 8 that divides R and fits the budget,
    # or the full extent when R is small (full extent is exempt from the
    # (8,128) divisibility rule).
    if R <= cap:
        S = R
    else:
        S = 0
        s = (cap // 8) * 8
        while s >= 8:
            if R % s == 0:
                S = s
                break
            s -= 8
        if S == 0:
            # Rare: no multiple-of-8 divisor fits; fall back to full extent.
            S = R

    # Batch tile: fold batches while staying under the row budget so small
    # spatial shapes still move multi-MB per step.
    Bt = 1
    for cand in range(B, 0, -1):
        if B % cand == 0 and cand * S <= cap:
            Bt = cand
            break
    return Bt, S


def split_concat(v1):
    B, C, H, W = v1.shape
    assert C == 3, "torch.split(v1, [1,1,1], dim=1) requires dim 1 of size 3"
    HW = H * W
    itemsize = jnp.dtype(v1.dtype).itemsize

    if HW % 128 == 0:
        # Lane- and sublane-dense layout: (B, 3, R, 128), R = HW // 128.
        R = HW // 128
        x = v1.reshape(B, C, R, 128)
        Bt, S = _pick_tiles(B, R, itemsize)

        # v7x: avoid a degenerate single-step grid so both TensorCores work.
        if (B // Bt) * (R // S) == 1:
            if B % 2 == 0 and B >= 2:
                Bt = B // 2
            elif R % 16 == 0:
                S = R // 2

        grid = (B // Bt, R // S)
        in_spec = pl.BlockSpec((Bt, C, S, 128), lambda b, r: (b, 0, r, 0))
        out_spec = pl.BlockSpec((Bt, 1, S, 128), lambda b, r: (b, 0, r, 0))
        out_shapes = tuple(
            jax.ShapeDtypeStruct((B, 1, R, 128), v1.dtype) for _ in range(3)
        )
        dims = ("parallel", "parallel")
    else:
        # Fallback for HW not a multiple of 128: full spatial extent per block
        # (correct; masked lane stores are a perf hazard only).
        x = v1.reshape(B, C, HW)
        cap_elems = _max_rows(itemsize) * 128
        Bt = 1
        for cand in range(B, 0, -1):
            if B % cand == 0 and cand * HW <= cap_elems:
                Bt = cand
                break
        grid = (B // Bt,)
        in_spec = pl.BlockSpec((Bt, C, HW), lambda b: (b, 0, 0))
        out_spec = pl.BlockSpec((Bt, 1, HW), lambda b: (b, 0, 0))
        out_shapes = tuple(
            jax.ShapeDtypeStruct((B, 1, HW), v1.dtype) for _ in range(3)
        )
        dims = ("parallel",)

    s0, s1, s2 = pl.pallas_call(
        _split_kernel,
        out_shape=out_shapes,
        grid=grid,
        in_specs=[in_spec],
        out_specs=(out_spec, out_spec, out_spec),
        compiler_params=pltpu.CompilerParams(
            dimension_semantics=dims,
            vmem_limit_bytes=_VMEM_LIMIT_BYTES,
        ),
    )(x)

    splits = tuple(s.reshape(B, 1, H, W) for s in (s0, s1, s2))

    # torch.cat(torch.split(v1,[1,1,1],1),1) == v1 exactly; return the input
    # directly instead of re-writing it to HBM through the kernel.
    concatenated = v1
    return concatenated, splits


if __name__ == "__main__":
    key = jax.random.PRNGKey(0)
    # Dim 1 must be exactly 3 for split([1,1,1], dim=1).
    x = jax.random.normal(key, (2, 3, 16, 16), dtype=jnp.float32)

    concat, splits = split_concat(x)
    jax.block_until_ready((concat, splits))

    # Sanity checks vs. reference semantics.
    assert concat.shape == x.shape
    assert all(s.shape == (2, 1, 16, 16) for s in splits)
    assert jnp.allclose(concat, x)
    assert jnp.allclose(splits[0], x[:, 0:1])
    assert jnp.allclose(splits[1], x[:, 1:2])
    assert jnp.allclose(splits[2], x[:, 2:3])

    print("KERNEL_OK")
</pallas_src>

<mosaic_0001>
module attributes {stable_mosaic.version = 11 : i64} {
  func.func @_split_kernel(%arg0: i32, %arg1: i32, %arg2: memref<1x3x2x128xf32, #tpu.memory_space<vmem>>, %arg3: memref<1x1x2x128xf32, #tpu.memory_space<vmem>>, %arg4: memref<1x1x2x128xf32, #tpu.memory_space<vmem>>, %arg5: memref<1x1x2x128xf32, #tpu.memory_space<vmem>>) attributes {dimension_semantics = [#tpu.dimension_semantics<parallel>, #tpu.dimension_semantics<parallel>], iteration_bounds = array<i64: 2, 1>, scalar_prefetch = 0 : i64, scratch_operands = 0 : i64, tpu.core_type = #tpu.core_type<tc>, window_params = [{transform_indices = @transform_0, window_bounds = array<i64: 1, 3, 2, 128>}, {transform_indices = @transform_1, window_bounds = array<i64: 1, 1, 2, 128>}, {transform_indices = @transform_2, window_bounds = array<i64: 1, 1, 2, 128>}, {transform_indices = @transform_3, window_bounds = array<i64: 1, 1, 2, 128>}]} {
    %c0 = arith.constant 0 : index
    %c0_0 = arith.constant 0 : index
    %c0_1 = arith.constant 0 : index
    %c0_2 = arith.constant 0 : index
    %0 = vector.load %arg2[%c0, %c0_0, %c0_1, %c0_2] : memref<1x3x2x128xf32, #tpu.memory_space<vmem>>, vector<1x1x2x128xf32>
    %c0_3 = arith.constant 0 : index
    %c0_4 = arith.constant 0 : index
    %c0_5 = arith.constant 0 : index
    %c0_6 = arith.constant 0 : index
    %1 = vector.load %arg3[%c0_3, %c0_4, %c0_5, %c0_6] : memref<1x1x2x128xf32, #tpu.memory_space<vmem>>, vector<1x1x2x128xf32>
    tpu.vector_store %arg3[%c0_3, %c0_4, %c0_5, %c0_6], %0 {strides = array<i32>} : memref<1x1x2x128xf32, #tpu.memory_space<vmem>>, vector<1x1x2x128xf32>,
    %c0_7 = arith.constant 0 : index
    %c1 = arith.constant 1 : index
    %c0_8 = arith.constant 0 : index
    %c0_9 = arith.constant 0 : index
    %2 = vector.load %arg2[%c0_7, %c1, %c0_8, %c0_9] : memref<1x3x2x128xf32, #tpu.memory_space<vmem>>, vector<1x1x2x128xf32>
    %c0_10 = arith.constant 0 : index
    %c0_11 = arith.constant 0 : index
    %c0_12 = arith.constant 0 : index
    %c0_13 = arith.constant 0 : index
    %3 = vector.load %arg4[%c0_10, %c0_11, %c0_12, %c0_13] : memref<1x1x2x128xf32, #tpu.memory_space<vmem>>, vector<1x1x2x128xf32>
    tpu.vector_store %arg4[%c0_10, %c0_11, %c0_12, %c0_13], %2 {strides = array<i32>} : memref<1x1x2x128xf32, #tpu.memory_space<vmem>>, vector<1x1x2x128xf32>,
    %c0_14 = arith.constant 0 : index
    %c2 = arith.constant 2 : index
    %c0_15 = arith.constant 0 : index
    %c0_16 = arith.constant 0 : index
    %4 = vector.load %arg2[%c0_14, %c2, %c0_15, %c0_16] : memref<1x3x2x128xf32, #tpu.memory_space<vmem>>, vector<1x1x2x128xf32>
    %c0_17 = arith.constant 0 : index
    %c0_18 = arith.constant 0 : index
    %c0_19 = arith.constant 0 : index
    %c0_20 = arith.constant 0 : index
    %5 = vector.load %arg5[%c0_17, %c0_18, %c0_19, %c0_20] : memref<1x1x2x128xf32, #tpu.memory_space<vmem>>, vector<1x1x2x128xf32>
    tpu.vector_store %arg5[%c0_17, %c0_18, %c0_19, %c0_20], %4 {strides = array<i32>} : memref<1x1x2x128xf32, #tpu.memory_space<vmem>>, vector<1x1x2x128xf32>,
    return
  }
  func.func @transform_0(%arg0: i32, %arg1: i32) -> (i32, i32, i32, i32) {
    %c0_i32 = arith.constant 0 : i32
    %c0_i32_0 = arith.constant 0 : i32
    %c0_i32_1 = arith.constant 0 : i32
    return %arg0, %c0_i32, %arg1, %c0_i32_0 : i32, i32, i32, i32
  }
  func.func @transform_1(%arg0: i32, %arg1: i32) -> (i32, i32, i32, i32) {
    %c0_i32 = arith.constant 0 : i32
    %c0_i32_0 = arith.constant 0 : i32
    %c0_i32_1 = arith.constant 0 : i32
    return %arg0, %c0_i32, %arg1, %c0_i32_0 : i32, i32, i32, i32
  }
  func.func @transform_2(%arg0: i32, %arg1: i32) -> (i32, i32, i32, i32) {
    %c0_i32 = arith.constant 0 : i32
    %c0_i32_0 = arith.constant 0 : i32
    %c0_i32_1 = arith.constant 0 : i32
    return %arg0, %c0_i32, %arg1, %c0_i32_0 : i32, i32, i32, i32
  }
  func.func @transform_3(%arg0: i32, %arg1: i32) -> (i32, i32, i32, i32) {
    %c0_i32 = arith.constant 0 : i32
    %c0_i32_0 = arith.constant 0 : i32
    %c0_i32_1 = arith.constant 0 : i32
    return %arg0, %c0_i32, %arg1, %c0_i32_0 : i32, i32, i32, i32
  }
}

</mosaic_0001>

<bundles_post_ra>
// kernel: tpu_custom_call.1
= control target key start
LH: loop header
LB: loop body
LE: loop exit
PB: predicated region body
PF: predicated region fallthrough
CT: control target
= control target key end

     0   :  { %s972_s0 = inlined_call_operand.hbm [shape: f32[2,3,2,128], index: 0, kind: input, shape index: {}]   ;;  %s973_s1 = inlined_call_operand.hbm [shape: f32[2,1,2,128], index: 1, kind: output, shape index: {0}]   ;;  %s974_s2 = inlined_call_operand.hbm [shape: f32[2,1,2,128], index: 2, kind: output, shape index: {1}]   ;;  %s975_s3 = inlined_call_operand.hbm [shape: f32[2,1,2,128], index: 3, kind: output, shape index: {2}]  }
   0x1   :  { %979 = sst [smem:[#allocation13_spill]] %s972_s0 }
   0x2   :  { %9 = vsyncpa [#allocation3], 0 }
   0x3   :  { %11 = vsyncpa [#allocation3 + $0x1], 0 }
   0x4   :  { %12 = vsyncpa [#allocation4], 0 }
   0x5   :  { %14 = vsyncpa [#allocation4 + $0x1], 0 }
   0x6   :  { %15 = vsyncpa [#allocation7], 0 }
   0x7   :  { %17 = vsyncpa [#allocation7 + $0x1], 0  ;;  %s729_s12 = smov 0   ;;  %s731_s13 = smov 0  }
   0x8   :  { %s733_s14 = smov 0   ;;  %s735_s15 = smov 0  }
   0x9   :  { %s737_s16 = smov 0   ;;  %s739_s17 = smov 0  }
   0xa LB: > { %s760_s18 = sadd.s32 4294967295, %s701_s17   ;;  %s977_s19 = sadd.s32 4294967294, %s701_s17   ;;  %s701_s17 = sphi %s739_s17, %s23_s17   ;;  %s697_s16 = sphi %s737_s16, %s997_s16   ;;  %s693_s15 = sphi %s735_s15, %s996_s15   ;;  %s689_s14 = sphi %s733_s14, %s995_s14   ;;  %s685_s13 = sphi %s731_s13, %s994_s13   ;;  %s681_s12 = sphi %s729_s12, %s993_s12  }
   0xb   : > { %s35_s20 = sadd.s32 1, %s697_s16  ;;  %s44_s21 = sadd.s32 1, %s689_s14 }
   0xc   : > { %p37_p0 = scmp.ge.s32.totalorder %s35_s20, 2  ;;  %p51_p1 = scmp.ne.s32.totalorder %s689_s14, %s685_s13 }
   0xd   : > { %p52_p2 = scmp.eq.s32.totalorder %s701_s17, 0  ;;  %p57_p3 = scmp.ne.s32.totalorder %s685_s13, %s681_s12 }
   0xe   : > { %s999_s20 = smov (%p37_p0, %s35_s20), 0  ;;  %p58_p5 = scmp.eq.s32.totalorder %s760_s18, 0 }
   0xf   : > { %980 = sst [smem:[#allocation12_spill]] %s999_s20  ;;  %p772_p4 = por %p52_p2, %p51_p1 }
  0x10   : > { %s39_s23 = ssub.s32 %s697_s16, %s999_s20  ;;  %p83_p6 = scmp.eq.s32.totalorder %s760_s18, 1 }
  0x11   : > { %p42_p7 = scmp.eq.s32.totalorder %s39_s23, 0  ;;  %p780_p8 = por %p58_p5, %p57_p3 }
  0x12   : > { %p784_p9 = por %p83_p6, %p51_p1  ;;  %p89_p10 = scmp.eq.s32.totalorder %s977_s19, 1 }
  0x13   : > { %s791_s26 = scalar_select %p42_p7, %s689_s14, %s44_s21  }
  0x14   : > { %s983_s25 = scalar_select %p784_p9, 1, 0 }
  0x15   : > { %p793_p11 = por %p89_p10, %p57_p3  ;;  %p477_p13 = scmp.lt.s32.totalorder %s701_s17, 2 }
  0x16   : > { %s165_s28 = sand.u32 1, %s689_s14   ;;  %s453_s30 = smul.u32 96, %s697_s16 }
  0x17   : > { %s984_s27 = scalar_select %p793_p11, 1, 0 }
  0x18   : > { %s452_s29 = smul.u32 6, %s165_s28  ;;  %p803_p0 = pnand %p477_p13, %p772_p4 }
  0x19   : > { %s986_s0 = sld [smem:[#allocation13_spill]]  ;;  %s815_s10 = scalar_lea.sflag [#allocation3], %s165_s28 }
  0x1a   : > { %s169_s8 = scalar_lea.vmem [#allocation2], %s452_s29  ;;  %p531_p3 = pneg %p803_p0 }
  0x1b   : > { %s177_s9 = sshll.u32 %s169_s8, 4  ;;  %s812_s9 = int_to_ptr.vmem [resolvable:$true] %s177_s9 }
  0x1f   : > { %s810_s7 = scalar_lea.hbm %s986_s0, %s453_s30  ;;  %s534_s23 = scalar_lea.hbm %s986_s0, 192 }
  0x20   : > { %s529_s11 = scalar_lea.hbm %s810_s7, 96  ;;  %p535_p6 = scmp.lt.u32.totalorder %s810_s7, %s986_s0 }
  0x21   : > { %p530_p2 = scmp.ne.s32.totalorder %s810_s7, %s529_s11  ;;  %p536_p7 = scmp.lt.u32.totalorder %s534_s23, %s529_s11 }
  0x22   : > { %p538_p13 = scmp.lt.u32.totalorder %s529_s11, %s810_s7 }
  0x23   : > { %p532_p4 = pnand %p531_p3, %p530_p2  ;;  %p537_p10 = por %p536_p7, %p535_p6 }
  0x25   : > { %p533_p5 = pneg %p532_p4  ;;  %p539_p12 = por %p538_p13, %p537_p10 }
  0x27   : > { %p540_p1 = pnand %p539_p12, %p533_p5 }
  0x29   : > { %543 = shalt.err (!%p540_p1)
}
  0x2a   : > { %s544_s28 = scalar_lea.vmem %s812_s9, 96  ;;  %s703_s5 = smov [#allocation2]  }
  0x2b   : > { %p545_p2 = scmp.ne.s32.totalorder %s812_s9, %s544_s28  ;;  %s549_s6 = sshll.u32 %s703_s5, 4  ;;  %s550_s6 = int_to_ptr.vmem [resolvable:$false] %s549_s6 }
  0x2c   : > { %s551_s8 = scalar_lea.vmem %s550_s6, 192  ;;  %p552_p9 = scmp.lt.s32.totalorder %s812_s9, %s550_s6 }
  0x2d   : > { %p547_p4 = pnand %p545_p2, %p531_p3  ;;  %p553_p6 = scmp.lt.s32.totalorder %s551_s8, %s544_s28 }
  0x2f   : > { %p548_p11 = pneg %p547_p4  ;;  %p554_p7 = por %p553_p6, %p552_p9 }
  0x31   : > { %p555_p10 = pnand %p554_p7, %p548_p11 }
  0x33   : > { %558 = shalt.err (!%p555_p10)
}
  0x34   : > { %s704_s11 = smov 32   ;;  %s705_s21 = smov 2  }
  0x35   : > { %466 = dma.hbm_to_vmem [thread:$0]  (!%p803_p0), %s810_s7, 96, %s812_s9, %s815_s10, %s704_s11, %s704_s11, %s705_s21  }
  0x36   : > { %p185_p12 = scmp.lt.s32.totalorder %s701_s17, 3  ;;  %p987_p1 = scmp.ge.s32.totalorder %s701_s17, 1 }
  0x38   : > { %p186_p3 = pnand %p987_p1, %p185_p12 }
  0x39   : > { %s847_s22 = sand.u32 (!%p186_p3), 1, %s685_s13  }
  0x3a   : > { %189 = sbr.rel (%p186_p3) target bundleno = 141 (0x8d), region = 24  ;;  %s192_s30 = scalar_lea.sflag (!%p186_p3), [#allocation3], %s847_s22 }
  0x3b   : > { %s454_s23 = smul.u32 (!%p186_p3), 6, %s847_s22 }
  0x3d   : > { %s195_s29 = scalar_lea.vmem (!%p186_p3), [#allocation2], %s454_s23 }
  0x41   : > { %668 = dma.done.wait (%p780_p8), %s192_s30, 96  }
  0x42   : > { %670 = vsyncadd (%p780_p8), %s192_s30, 4294967200  ;;  %s439_s4 = sshll.u32 %s847_s22, 1  ;;  %s241_s5 = sand.u32 1, %s760_s18   ;;  %v442_v0 = vld [vmem:[%s195_s29 + $0x2] sm:$0x3] }
  0x43   : > { %s220_s7 = scalar_lea.vmem [#allocation6], %s439_s4  ;;  %s213_s10 = scalar_lea.vmem [#allocation5], %s439_s4  ;;  %v228_v1 = vld [vmem:[%s195_s29] sm:$0x3]  ;;  %v443_v2 = vld [vmem:[%s195_s29 + $0x4] sm:$0x3] }
  0x44   : > { %s275_s9 = sshll.u32 %s220_s7, 4  ;;  %s261_s28 = sshll.u32 %s213_s10, 4  ;;  %232 = vst [vmem:[%s220_s7] sm:$0x3] %v442_v0  ;;  %229 = vst [vmem:[%s213_s10] sm:$0x3] %v228_v1  ;;  %s856_s9 = int_to_ptr.vmem [resolvable:$true] %s275_s9  ;;  %s859_s28 = int_to_ptr.vmem [resolvable:$true] %s261_s28 }
  0x45   : > { %s227_s6 = scalar_lea.vmem [#allocation8], %s439_s4  ;;  %s447_s24 = sshll.u32 %s693_s15, 5 }
  0x46   : > { %s289_s8 = sshll.u32 %s227_s6, 4  ;;  %s865_s23 = scalar_lea.hbm %s974_s2, %s447_s24  ;;  %235 = vst [vmem:[%s227_s6] sm:$0x3] %v443_v2  ;;  %s867_s8 = int_to_ptr.vmem [resolvable:$true] %s289_s8 }
  0x47   : > { %s872_s19 = scalar_lea.hbm %s973_s1, %s447_s24  ;;  %s877_s11 = scalar_lea.hbm %s975_s3, %s447_s24 }
  0x48   : > { %s879_s21 = scalar_lea.sflag [#allocation7], %s241_s5  ;;  %s559_s0 = scalar_lea.vmem %s856_s9, 32 }
  0x49   : > { %p560_p8 = scmp.ne.s32.totalorder %s856_s9, %s559_s0  ;;  %p988_p9 = scmp.ne.s32.totalorder %s983_s25, 0 }
  0x4a   : > { %s706_s29 = smov [#allocation6]  }
  0x4b   : > { %p561_p11 = pnand %p560_p8, %p988_p9  ;;  %s563_s20 = sshll.u32 %s706_s29, 4  ;;  %s564_s20 = int_to_ptr.vmem [resolvable:$false] %s563_s20 }
  0x4c   : > { %s565_s18 = scalar_lea.vmem %s564_s20, 64  ;;  %p566_p5 = scmp.lt.s32.totalorder %s856_s9, %s564_s20 }
  0x4d   : > { %p562_p0 = pneg %p561_p11  ;;  %p567_p13 = scmp.lt.s32.totalorder %s565_s18, %s559_s0 }
  0x4f   : > { %p568_p2 = por %p567_p13, %p566_p5 }
  0x51   : > { %p569_p4 = pnand %p568_p2, %p562_p0 }
  0x53   : > { %572 = shalt.err (!%p569_p4)
}
  0x54   : > { %s573_s7 = scalar_lea.hbm %s865_s23, 32  ;;  %s577_s6 = scalar_lea.hbm %s974_s2, 64 }
  0x55   : > { %p574_p6 = scmp.ne.s32.totalorder %s865_s23, %s573_s7  ;;  %p578_p12 = scmp.lt.u32.totalorder %s865_s23, %s974_s2 }
  0x56   : > { %p579_p1 = scmp.lt.u32.totalorder %s577_s6, %s573_s7  ;;  %p581_p8 = scmp.lt.u32.totalorder %s573_s7, %s865_s23 }
  0x57   : > { %p575_p7 = pnand %p574_p6, %p988_p9 }
  0x58   : > { %p580_p3 = por %p579_p1, %p578_p12 }
  0x59   : > { %p576_p10 = pneg %p575_p7 }
  0x5a   : > { %p582_p11 = por %p581_p8, %p580_p3 }
  0x5c   : > { %p583_p0 = pnand %p582_p11, %p576_p10 }
  0x5e   : > { %586 = shalt.err (!%p583_p0)
}
  0x5f   : > { %458 = dma.vmem_to_hbm [thread:$0]  (%p988_p9), %s856_s9, 32, %s865_s23, %s879_s21  }
  0x60   : > { %s237_s0 = scalar_lea.sflag [#allocation4], %s847_s22  ;;  %s587_s30 = scalar_lea.vmem %s859_s28, 32 }
  0x61   : > { %p588_p5 = scmp.ne.s32.totalorder %s859_s28, %s587_s30  ;;  %s707_s15 = smov [#allocation5]  }
  0x62   : > { %s591_s4 = sshll.u32 %s707_s15, 4  ;;  %s592_s4 = int_to_ptr.vmem [resolvable:$false] %s591_s4 }
  0x63   : > { %p589_p13 = pnand %p588_p5, %p988_p9  ;;  %s593_s29 = scalar_lea.vmem %s592_s4, 64 }
  0x64   : > { %p594_p4 = scmp.lt.s32.totalorder %s859_s28, %s592_s4  ;;  %p595_p6 = scmp.lt.s32.totalorder %s593_s29, %s587_s30 }
  0x65   : > { %p590_p2 = pneg %p589_p13 }
  0x66   : > { %p596_p7 = por %p595_p6, %p594_p4 }
  0x68   : > { %p597_p10 = pnand %p596_p7, %p590_p2 }
  0x6a   : > { %600 = shalt.err (!%p597_p10)
}
  0x6b   : > { %s601_s22 = scalar_lea.hbm %s872_s19, 32  ;;  %s605_s18 = scalar_lea.hbm %s973_s1, 64 }
  0x6c   : > { %p602_p12 = scmp.ne.s32.totalorder %s872_s19, %s601_s22  ;;  %p606_p8 = scmp.lt.u32.totalorder %s872_s19, %s973_s1 }
  0x6d   : > { %p607_p11 = scmp.lt.u32.totalorder %s605_s18, %s601_s22  ;;  %p609_p5 = scmp.lt.u32.totalorder %s601_s22, %s872_s19 }
  0x6e   : > { %p603_p1 = pnand %p602_p12, %p988_p9 }
  0x6f   : > { %p608_p0 = por %p607_p11, %p606_p8 }
  0x70   : > { %p604_p3 = pneg %p603_p1 }
  0x71   : > { %p610_p13 = por %p609_p5, %p608_p0 }
  0x73   : > { %p611_p2 = pnand %p610_p13, %p604_p3 }
  0x75   : > { %614 = shalt.err (!%p611_p2)
}
  0x76   : > { %457 = dma.vmem_to_hbm [thread:$0]  (%p988_p9), %s859_s28, 32, %s872_s19, %s237_s0  }
  0x77   : > { %s615_s5 = scalar_lea.vmem %s867_s8, 32  ;;  %s708_s6 = smov [#allocation8]  }
  0x78   : > { %p616_p4 = scmp.ne.s32.totalorder %s867_s8, %s615_s5  ;;  %s619_s24 = sshll.u32 %s708_s6, 4  ;;  %s620_s24 = int_to_ptr.vmem [resolvable:$false] %s619_s24 }
  0x79   : > { %s621_s20 = scalar_lea.vmem %s620_s24, 64  ;;  %p622_p10 = scmp.lt.s32.totalorder %s867_s8, %s620_s24 }
  0x7a   : > { %p617_p6 = pnand %p616_p4, %p988_p9  ;;  %p623_p12 = scmp.lt.s32.totalorder %s621_s20, %s615_s5 }
  0x7c   : > { %p618_p7 = pneg %p617_p6  ;;  %p624_p1 = por %p623_p12, %p622_p10 }
  0x7e   : > { %p625_p3 = pnand %p624_p1, %p618_p7 }
  0x80   : > { %628 = shalt.err (!%p625_p3)
}
  0x81   : > { %s629_s19 = scalar_lea.hbm %s877_s11, 32  ;;  %s633_s30 = scalar_lea.hbm %s975_s3, 64 }
  0x82   : > { %p630_p8 = scmp.ne.s32.totalorder %s877_s11, %s629_s19  ;;  %p634_p5 = scmp.lt.u32.totalorder %s877_s11, %s975_s3 }
  0x83   : > { %p635_p13 = scmp.lt.u32.totalorder %s633_s30, %s629_s19  ;;  %p637_p4 = scmp.lt.u32.totalorder %s629_s19, %s877_s11 }
  0x84   : > { %p631_p11 = pnand %p630_p8, %p988_p9 }
  0x85   : > { %p636_p2 = por %p635_p13, %p634_p5 }
  0x86   : > { %p632_p0 = pneg %p631_p11 }
  0x87   : > { %p638_p6 = por %p637_p4, %p636_p2 }
  0x89   : > { %p639_p7 = pnand %p638_p6, %p632_p0 }
  0x8b   : > { %642 = shalt.err (!%p639_p7)
}
  0x8c   : > { %459 = dma.vmem_to_hbm [thread:$0]  (%p988_p9), %s867_s8, 32, %s877_s11, %s879_s21  }
  0x8d PF: > { %s301_s29 = sand.u32 1, %s681_s12   ;;  %p989_p10 = scmp.ne.s32.totalorder %s984_s27, 0 }
  0x8e   : > { %p990_p12 = scmp.ge.s32.totalorder %s701_s17, 2  ;;  %s302_s22 = scalar_lea.sflag [#allocation4], %s301_s29 }
  0x90   : > { %p468_p1 = pnand %p990_p12, %p989_p10 }
  0x92   : > { %672 = dma.done.wait (!%p468_p1), %s302_s22, 32  }
  0x93   : > { %674 = vsyncadd (!%p468_p1), %s302_s22, 4294967264  ;;  %s991_s9 = sadd.s32 4294967294, %s701_s17  }
  0x94   : > { %s310_s23 = sand.u32 1, %s991_s9  }
  0x95   : > { %s311_s18 = scalar_lea.sflag [#allocation7], %s310_s23 }
  0x96   : > { %676 = dma.done.wait (!%p468_p1), %s311_s18, 64  }
  0x97   : > { %678 = vsyncadd (!%p468_p1), %s311_s18, 4294967232  ;;  %s23_s17 = sadd.s32 1, %s701_s17   ;;  %s992_s25 = sld [smem:[#allocation12_spill]] }
  0x98   : > { %p20_p9 = scmp.ge.s32.totalorder %s23_s17, 4   ;;  %s993_s12 = smov %s685_s13 }
  0x99   : > { %s994_s13 = smov %s689_s14  ;;  %s995_s14 = smov %s791_s26 }
  0x9a   : > { %s996_s15 = smov %s697_s16  ;;  %22 = sbr.rel (!%p20_p9) target bundleno = 10 (0xa), region = 103 }
  0x9d   : > { %s997_s16 = smov %s992_s25 }
  0xa1   :  { %325 = vsyncpa [#allocation3], 1 }
  0xa2   :  { %327 = vsyncpa [#allocation3 + $0x1], 1 }
  0xa3   :  { %328 = vsyncpa [#allocation4], 1 }
  0xa4   :  { %330 = vsyncpa [#allocation4 + $0x1], 1 }
  0xa5   :  { %331 = vsyncpa [#allocation7], 1 }
  0xa6   :  { %333 = vsyncpa [#allocation7 + $0x1], 1 }

</bundles_post_ra>
